<compile_context>
chip_gen: v6e
topology: v6e:2x2x1
jax: 0.10.0
libtpu: 0.0.40
codegen_flags: <defaults>
</compile_context>

<pallas_src>
import functools

import jax
import jax.numpy as jnp
from jax.experimental import pallas as pl
from jax.experimental.pallas import tpu as pltpu

_MAX_BLOCK_ELEMS = 512 * 1024      # ~2 MiB f32 per tiled block
_FUSED_MAX_ELEMS = 512 * 1024      # fused single-kernel path up to this many elems
_VMEM_LIMIT = 32 * 1024 * 1024     # explicit scoped-VMEM limit (safe on v5e/v6e/v7x)
_LANE_CANDIDATES = (1024, 512, 256, 128)


def _round_up(v, m):
    return -(-v // m) * m


def _stat_kind(w_bit, mode, alg):
    """Which single global statistic the (static) branch needs, or None."""
    if w_bit == 32:
        return 'tanh_abs_max'
    if w_bit == 1:
        return None if mode == 'ringonn' else 'abs_mean'
    return 'tanh_abs_max' if alg == 'dorefa' else 'minmax'


def _free_2d_view(shape, n):
    """(rows, cols) with rows*cols == n such that x.reshape(rows, cols) is free."""
    for c in _LANE_CANDIDATES:
        if n % c == 0:
            return n // c, c
    c = shape[-1] if len(shape) else 1
    return n // c, c


# ---------------------------------------------------------------------------
# FUSED kernel: whole tensor resident in VMEM; statistic + quantization in one
# body.  The branch (w_bit / mode / alg) is static, resolved at trace time.
# ---------------------------------------------------------------------------
def _fused_kernel(x_ref, o_ref, *, w_bit, mode, alg, numel):
    x = x_ref[...].astype(jnp.float32)

    if w_bit == 32:
        t = jnp.tanh(x)
        out = t / jnp.max(jnp.abs(t))
    elif w_bit == 1:
        if mode == 'ringonn':
            out = jnp.sign(x) / 4.0 + 0.5
        else:
            e = jnp.sum(jnp.abs(x)) / float(numel)            # mean|x|
            out = (jnp.sign(x / e) * e + e) / 2.0
    elif alg == 'dorefa':
        levels = float(2 ** w_bit - 1)
        t = jnp.tanh(x)
        w = t / 2.0 / jnp.max(jnp.abs(t)) + 0.5               # reference order
        out = jnp.round(w * levels) / levels
    else:  # qnn
        levels = float(2 ** w_bit - 1)
        x_min = jnp.min(x)
        x_max = jnp.max(x)
        x_range = x_max - x_min
        xn = (x - x_min) / x_range
        out = jnp.round(xn * levels) / levels * x_range + x_min

    o_ref[...] = out.astype(o_ref.dtype)


# ---------------------------------------------------------------------------
# TILED pass 1: global statistic.  Grid axis = reduction ("arbitrary").
# Each block is reduced to a scalar (VPU + tiny XLU tail) and folded into an
# (8,128) VMEM accumulator; the (8,128) result tile is written at the last
# step.  A partial last row-block is masked with a statistic-neutral value.
# ---------------------------------------------------------------------------
def _stats_kernel(x_ref, out_ref, *acc_refs, stat, total_rows, block_rows, numel):
    i = pl.program_id(0)
    last = pl.num_programs(0) - 1
    x = x_ref[...].astype(jnp.float32)

    if total_rows % block_rows:                               # static check
        row = jax.lax.broadcasted_iota(jnp.int32, x.shape, 0) + i * block_rows
        valid = row < total_rows

        def masked(v, neutral):
            return jnp.where(valid, v, neutral)
    else:
        def masked(v, neutral):
            return v

    if stat == 'minmax':                                      # qnn
        acc_min, acc_max = acc_refs

        @pl.when(i == 0)
        def _():
            acc_min[...] = jnp.full(acc_min.shape, jnp.inf, jnp.float32)
            acc_max[...] = jnp.full(acc_max.shape, -jnp.inf, jnp.float32)

        acc_min[...] = jnp.minimum(acc_min[...], jnp.min(masked(x, jnp.inf)))
        acc_max[...] = jnp.maximum(acc_max[...], jnp.max(masked(x, -jnp.inf)))

        @pl.when(i == last)
        def _():
            lane = jax.lax.broadcasted_iota(jnp.int32, (8, 128), 1)
            # lane 0 holds the global min, every other lane the global max.
            out_ref[...] = jnp.where(lane == 0, acc_min[...], acc_max[...])

    elif stat == 'tanh_abs_max':                              # dorefa / 32-bit
        (acc,) = acc_refs

        @pl.when(i == 0)
        def _():
            acc[...] = jnp.zeros(acc.shape, jnp.float32)

        # Accumulate max|x|; tanh is applied once at the end (odd + monotone:
        # max|tanh x| == tanh(max|x|)), removing a full-tensor EUP pass.
        acc[...] = jnp.maximum(acc[...], jnp.max(masked(jnp.abs(x), 0.0)))

        @pl.when(i == last)
        def _():
            out_ref[...] = jnp.tanh(acc[...])

    elif stat == 'abs_mean':                                  # 1-bit
        (acc,) = acc_refs

        @pl.when(i == 0)
        def _():
            acc[...] = jnp.zeros(acc.shape, jnp.float32)

        acc[...] = acc[...] + jnp.sum(masked(jnp.abs(x), 0.0))

        @pl.when(i == last)
        def _():
            out_ref[...] = acc[...] / float(numel)            # mean|x|

    else:
        raise ValueError(stat)


# ---------------------------------------------------------------------------
# TILED pass 2: elementwise quantization.  The (8,128) statistics tile is a
# VMEM input; per-block scalar derivation is a couple of tiny reduces.
# ---------------------------------------------------------------------------
def _quant_kernel(*refs, w_bit, mode, alg):
    if len(refs) == 3:
        stats_ref, x_ref, o_ref = refs
        s = stats_ref[...]
    else:
        x_ref, o_ref = refs
        s = None

    x = x_ref[...].astype(jnp.float32)

    if w_bit == 32:
        maxv = jnp.max(s)                         # tanh(max|x|) == max|tanh x|
        out = jnp.tanh(x) / maxv
    elif w_bit == 1:
        if mode == 'ringonn':
            out = jnp.sign(x) / 4.0 + 0.5
        else:
            e = jnp.max(s)                        # mean|x|
            out = (jnp.sign(x / e) * e + e) / 2.0
    elif alg == 'dorefa':
        levels = float(2 ** w_bit - 1)
        maxv = jnp.max(s)                         # tanh(max|x|) == max|tanh x|
        w = jnp.tanh(x) / 2.0 / maxv + 0.5        # keep reference division order
        out = jnp.round(w * levels) / levels
    else:  # qnn
        levels = float(2 ** w_bit - 1)
        x_min = jnp.min(s)                        # lane 0 of the stats tile
        x_max = jnp.max(s)                        # all other lanes
        x_range = x_max - x_min
        xn = (x - x_min) / x_range
        out = jnp.round(xn * levels) / levels * x_range + x_min

    o_ref[...] = out.astype(o_ref.dtype)


# ---------------------------------------------------------------------------
# Wrapper == weight_quantize_fn(w_bit, mode, alg).forward(x)
# ---------------------------------------------------------------------------
@functools.partial(jax.jit, static_argnums=(1, 2, 3))
def weight_quantize(x, w_bit, mode='oconv', alg='dorefa'):
    assert w_bit <= 32
    assert alg in ('dorefa', 'qnn'), '[E] Only support Dorefa and QNN Algorithms'

    orig_shape = x.shape
    orig_dtype = x.dtype
    n = x.size
    if n == 0:
        return x

    stat = _stat_kind(w_bit, mode, alg)
    R, C = _free_2d_view(orig_shape, n)
    C_pad = _round_up(C, 128)

    # -------------------------------------------------------------- FUSED ---
    if n <= _FUSED_MAX_ELEMS and _round_up(R, 8) * C_pad <= _FUSED_MAX_ELEMS:
        x2 = x.reshape(R, C)                                   # free reshape
        yq = pl.pallas_call(
            functools.partial(_fused_kernel, w_bit=w_bit, mode=mode, alg=alg,
                              numel=n),
            out_shape=jax.ShapeDtypeStruct((R, C), orig_dtype),
            grid=(1,),
            in_specs=[pl.BlockSpec((R, C), lambda i: (0, 0))],
            out_specs=pl.BlockSpec((R, C), lambda i: (0, 0)),
            compiler_params=pltpu.CompilerParams(vmem_limit_bytes=_VMEM_LIMIT),
        )(x2)
        return yq.reshape(orig_shape)

    # -------------------------------------------------------------- TILED ---
    pad = 0
    if 8 * C_pad > _MAX_BLOCK_ELEMS:
        # Pathological shape (large ragged tensor whose trailing dim alone
        # exceeds a block): pad with a statistic-neutral value.  This is the
        # only path that copies the tensor.
        C = C_pad = 1024
        R = -(-n // C)
        pad = R * C - n
        xf = x.reshape(-1)
        pad_val = xf[0] if stat == 'minmax' else jnp.zeros((), xf.dtype)
        x2 = jnp.concatenate([xf, jnp.full((pad,), pad_val, xf.dtype)]).reshape(R, C)
    else:
        x2 = x.reshape(R, C)                                   # free reshape

    if R <= 8:
        BR = R
    else:
        BR = min((_MAX_BLOCK_ELEMS // C_pad) // 8 * 8, (R // 8) * 8)
    nblocks = -(-R // BR)

    # pass 1: global statistic (skipped entirely for 1-bit 'ringonn')
    stats = None
    if stat is not None:
        n_acc = 2 if stat == 'minmax' else 1
        stats = pl.pallas_call(
            functools.partial(_stats_kernel, stat=stat, total_rows=R,
                              block_rows=BR, numel=n),
            out_shape=jax.ShapeDtypeStruct((8, 128), jnp.float32),
            grid=(nblocks,),
            in_specs=[pl.BlockSpec((BR, C), lambda i: (i, 0))],
            out_specs=pl.BlockSpec((8, 128), lambda i: (0, 0)),
            scratch_shapes=[pltpu.VMEM((8, 128), jnp.float32)] * n_acc,
            compiler_params=pltpu.CompilerParams(
                dimension_semantics=("arbitrary",),
                vmem_limit_bytes=_VMEM_LIMIT),
        )(x2)

    # pass 2: elementwise quantization (stats tile fed straight in)
    in_specs = [pl.BlockSpec((BR, C), lambda i: (i, 0))]
    args = [x2]
    if stats is not None:
        in_specs.insert(0, pl.BlockSpec((8, 128), lambda i: (0, 0)))
        args.insert(0, stats)

    yq = pl.pallas_call(
        functools.partial(_quant_kernel, w_bit=w_bit, mode=mode, alg=alg),
        out_shape=jax.ShapeDtypeStruct((R, C), orig_dtype),
        grid=(nblocks,),
        in_specs=in_specs,
        out_specs=pl.BlockSpec((BR, C), lambda i: (i, 0)),
        compiler_params=pltpu.CompilerParams(
            dimension_semantics=("parallel",),
            vmem_limit_bytes=_VMEM_LIMIT),
    )(*args)

    y = yq
    if pad:
        y = y.reshape(-1)[:n]
    return y.reshape(orig_shape)


# ---------------------------------------------------------------------------
# Pure-JAX reference (mirrors the PyTorch forward) for verification.
# ---------------------------------------------------------------------------
def _reference(x, w_bit, mode='oconv', alg='dorefa'):
    x = x.astype(jnp.float32)

    def uq(v, k):
        if k == 32:
            return v
        if k == 1:
            return jnp.sign(v)
        n = float(2 ** k - 1)
        return jnp.round(v * n) / n

    if w_bit == 32:
        w = jnp.tanh(x)
        return w / jnp.max(jnp.abs(w))
    if w_bit == 1:
        if mode == 'ringonn':
            return uq(x, 1) / 4.0 + 0.5
        e = jnp.mean(jnp.abs(x))
        return (uq(x / e, 1) * e + e) / 2.0
    if alg == 'dorefa':
        w = jnp.tanh(x)
        w = w / 2.0 / jnp.max(jnp.abs(w)) + 0.5
        return uq(w, w_bit)
    x_min = jnp.min(x)
    x_max = jnp.max(x)
    r = x_max - x_min
    return uq((x - x_min) / r, w_bit) * r + x_min


def _check(out, ref, w_bit, alg, info):
    if w_bit in (1, 32) or alg == 'qnn':
        assert jnp.allclose(out, ref, atol=1e-5, rtol=1e-5), info
    else:
        # k-bit dorefa: elements sitting exactly on a round() boundary may
        # flip by one quantization level if the kernel's tanh differs from
        # XLA's by an ulp; require diffs to be rare and at most one level.
        step = 1.0 / float(2 ** w_bit - 1)
        diff = jnp.abs(out.astype(jnp.float32) - ref.astype(jnp.float32))
        assert float(jnp.max(diff)) <= step + 1e-5, info
        assert float(jnp.mean((diff > 1e-5).astype(jnp.float32))) < 1e-3, info


# TODO(synk): uniform_quantize's STE backward (identity grad with clamp) is an
# autograd rule, not a forward op; only the forward pass is implemented here.

if __name__ == "__main__":
    key = jax.random.PRNGKey(0)
    k1, k2, k3, k4 = jax.random.split(key, 4)

    small_inputs = [
        jax.random.normal(k1, (2, 4, 16, 16), dtype=jnp.float32),    # fused, lane-dense
        jax.random.normal(k2, (3, 5, 7, 11), dtype=jnp.float32),     # fused, ragged
    ]
    big_inputs = [
        jax.random.normal(k3, (256, 256, 3, 3), dtype=jnp.float32),  # tiled, lane-dense, masked tail block
        jax.random.normal(k4, (1000, 999), dtype=jnp.float32),       # tiled, ragged lanes + masked rows
    ]

    all_configs = [
        (32, 'oconv', 'dorefa'),
        (1, 'oconv', 'dorefa'),
        (1, 'ringonn', 'dorefa'),
        (4, 'oconv', 'dorefa'),
        (4, 'oconv', 'qnn'),
    ]
    big_configs = [
        (32, 'oconv', 'dorefa'),
        (1, 'oconv', 'dorefa'),
        (4, 'oconv', 'dorefa'),
        (4, 'oconv', 'qnn'),
    ]

    for inputs, configs in ((small_inputs, all_configs), (big_inputs, big_configs)):
        for x in inputs:
            for w_bit, mode, alg in configs:
                out = jax.block_until_ready(weight_quantize(x, w_bit, mode, alg))
                ref = _reference(x, w_bit, mode=mode, alg=alg)
                assert out.shape == x.shape and out.dtype == x.dtype
                _check(out, ref, w_bit, alg, (x.shape, w_bit, mode, alg))

    print("KERNEL_OK")
</pallas_src>

<mosaic_0001>
module attributes {stable_mosaic.version = 11 : i64} {
  func.func @_fused_kernel(%arg0: i32, %arg1: memref<2x1024xf32, #tpu.memory_space<vmem>>, %arg2: memref<2x1024xf32, #tpu.memory_space<vmem>>) attributes {dimension_semantics = [#tpu.dimension_semantics<arbitrary>], iteration_bounds = array<i64: 1>, scalar_prefetch = 0 : i64, scratch_operands = 0 : i64, tpu.core_type = #tpu.core_type<tc>, window_params = [{pipeline_mode = #tpu.pipeline_mode<synchronous>, transform_indices = @transform_0, window_bounds = array<i64: 2, 1024>}, {pipeline_mode = #tpu.pipeline_mode<synchronous>, transform_indices = @transform_1, window_bounds = array<i64: 2, 1024>}]} {
    %c0 = arith.constant 0 : index
    %c0_0 = arith.constant 0 : index
    %0 = vector.load %arg1[%c0, %c0_0] : memref<2x1024xf32, #tpu.memory_space<vmem>>, vector<2x1024xf32>
    %1 = math.tanh %0 : vector<2x1024xf32>
    %2 = math.absf %1 : vector<2x1024xf32>
    %3 = vector.shape_cast %2 : vector<2x1024xf32> to vector<1x2x1024xf32>
    %cst = arith.constant dense<0xFF800000> : vector<1xf32>
    %4 = vector.multi_reduction <maximumf>, %3, %cst [1, 2] : vector<1x2x1024xf32> to vector<1xf32>
    %5 = vector.shape_cast %4 : vector<1xf32> to vector<1x1x1xf32>
    %6 = vector.extract %5[0, 0, 0] : f32 from vector<1x1x1xf32>
    %7 = vector.broadcast %6 : f32 to vector<2x1024xf32>
    %8 = arith.divf %1, %7 : vector<2x1024xf32>
    %c0_1 = arith.constant 0 : index
    %c0_2 = arith.constant 0 : index
    %9 = vector.load %arg2[%c0_1, %c0_2] : memref<2x1024xf32, #tpu.memory_space<vmem>>, vector<2x1024xf32>
    tpu.vector_store %arg2[%c0_1, %c0_2], %8 {strides = array<i32>} : memref<2x1024xf32, #tpu.memory_space<vmem>>, vector<2x1024xf32>,
    return
  }
  func.func @transform_0(%arg0: i32) -> (i32, i32) {
    %c0_i32 = arith.constant 0 : i32
    %c0_i32_0 = arith.constant 0 : i32
    %c0_i32_1 = arith.constant 0 : i32
    return %c0_i32, %c0_i32_0 : i32, i32
  }
  func.func @transform_1(%arg0: i32) -> (i32, i32) {
    %c0_i32 = arith.constant 0 : i32
    %c0_i32_0 = arith.constant 0 : i32
    %c0_i32_1 = arith.constant 0 : i32
    return %c0_i32, %c0_i32_0 : i32, i32
  }
}

</mosaic_0001>

<bundles_post_ra>
// kernel: weight_quantize.1
= control target key start
LH: loop header
LB: loop body
LE: loop exit
PB: predicated region body
PF: predicated region fallthrough
CT: control target
= control target key end

     0   :  { %v102_v2 = vmov 1983009808   ;;  %v20_v4 = vlaneseq  ;;  %vm58_vm0 = vcmask 1041408   ;;  %s133_s0 = inlined_call_operand.vmem [shape: f32[2,1024], index: 0, kind: input, shape index: {}]   ;;  %s134_s1 = inlined_call_operand.vmem [shape: f32[2,1024], index: 1, kind: output, shape index: {}]  }
   0x1   :  { %v8_v0 = vld [vmem:[%s133_s0] sm:$0xff]  ;;  %v9_v1 = vld [vmem:[%s133_s0 + $0x8] sm:$0xff]  ;;  %v18_v3 = vunpack.c.l.s4 %v102_v2 }
   0x2   :  { %96 = vtanh.f32 %v8_v0  ;;  %v21_v6 = vshrl.u32 %v20_v4, 7 }
   0x3   :  { %98 = vtanh.f32 %v9_v1  ;;  %v19_v5 = vunpack.c.0.s8 %v18_v3 }
   0x5   :  { %v22_v7 = vsub.s32 %v19_v5, %v21_v6 }
   0xf   :  { %v97_v8 = vpop.eup %96 }
  0x10   :  { %v99_v9 = vpop.eup %98  ;;  %v12_v10 = vand.u32 2147483647, %v97_v8 }
  0x11   :  { %v13_v11 = vand.u32 2147483647, %v99_v9 }
  0x12   :  { %v16_v12 = vcombine.high %v12_v10, %v12_v10  ;;  %v23_v13 = vrot.slane %v12_v10, %v22_v7 }
  0x13   :  { %v33_v14 = vcombine.high %v13_v11, %v13_v11  ;;  %v40_v15 = vrot.slane %v13_v11, %v22_v7 }
  0x14   :  { %v30_v16 = vrot.slane %v16_v12, %v22_v7  ;;  %v31_v17 = vcombine.high %v23_v13, %v23_v13  ;;  %v59_v18 = vsel %vm58_vm0, %v23_v13, -inf }
  0x15   :  { %v47_v19 = vrot.slane %v33_v14, %v22_v7  ;;  %v48_v20 = vcombine.high %v40_v15, %v40_v15  ;;  %v63_v21 = vsel %vm58_vm0, %v40_v15, -inf }
  0x16   :  { %v32_v22 = vcombine.high %v30_v16, %v30_v16  ;;  %v60_v23 = vsel %vm58_vm0, %v31_v17, -inf  ;;  %v61_v24 = vsel %vm58_vm0, %v30_v16, -inf  ;;  %v64_v25 = vmax.f32 %v59_v18, %v63_v21 }
  0x17   :  { %v49_v26 = vcombine.high %v47_v19, %v47_v19  ;;  %v65_v27 = vsel %vm58_vm0, %v48_v20, -inf  ;;  %v67_v28 = vsel %vm58_vm0, %v47_v19, -inf }
  0x18   :  { %v62_v29 = vsel %vm58_vm0, %v32_v22, -inf  ;;  %v66_v30 = vmax.f32 %v60_v23, %v65_v27  ;;  %v68_v31 = vmax.f32 %v61_v24, %v67_v28 }
  0x19   :  { %v69_v32 = vsel %vm58_vm0, %v49_v26, -inf }
  0x1a   :  { %v70_v33 = vmax.f32 %v62_v29, %v69_v32  ;;  %v71_v34 = vmax.f32 %v64_v25, %v66_v30 }
  0x1c   :  { %v72_v35 = vmax.f32 %v68_v31, %v70_v33 }
  0x1e   :  { %v73_v36 = vmax.f32 %v71_v34, %v72_v35 }
  0x20   :  { %74 = vmax.xlane.f32.xlu0 %v73_v36 }
  0xa9   :  { %v75_v37 = vpop.xlane.xlu0 %74 }
  0xaa   :  { %v76_v38 = vrot.slane %v75_v37, 4 }
  0xac   :  { %v77_v39 = vmax.f32 %v75_v37, %v76_v38 }
  0xae   :  { %v78_v40 = vrot.slane %v77_v39, 2 }
  0xb0   :  { %v79_v41 = vmax.f32 %v77_v39, %v78_v40 }
  0xb2   :  { %v80_v42 = vrot.slane %v79_v41, 1 }
  0xb4   :  { %v81_v43 = vmax.f32 %v79_v41, %v80_v42 }
  0xb6   :  { %93 = vpush %v81_v43 }
  0xe7   :  { %s94_s0 = spop %93 }
  0xe8   :  { %v83_v44 = vstv %s94_s0 }
  0xe9   :  { %100 = vrcp.f32 %v83_v44 }
  0xf6   :  { %v101_v45 = vpop.eup %100 }
  0xf7   :  { %v85_v46 = vmul.f32 %v101_v45, %v97_v8  ;;  %v86_v47 = vmul.f32 %v101_v45, %v99_v9 }
  0xf9   :  { %87 = vst [vmem:[%s134_s1] sm:$0xff] %v85_v46  ;;  %88 = vst [vmem:[%s134_s1 + $0x8] sm:$0xff] %v86_v47 }

</bundles_post_ra>
